<compile_context>
chip_gen: v7x
topology: tpu7x:2x2x1
jax: 0.10.0
libtpu: 0.0.40
codegen_flags: <defaults>
</compile_context>

<pallas_src>
import functools

import jax
import jax.numpy as jnp
from jax.experimental import pallas as pl
from jax.experimental.pallas import tpu as pltpu


def _mlp_kernel(x_ref, w1_ref, b1_ref, w2_ref, b2_ref, w3_ref, b3_ref, o_ref):
    """Fused 3-layer MLP forward for one batch tile. All operands resident in VMEM.

    x / w* are bf16 (MXU-native); accumulation, bias-add and ReLU are f32.
    """
    x = x_ref[...]                                                       # bf16 (bb, F)

    # fc1 + ReLU
    h1 = jnp.dot(x, w1_ref[...], preferred_element_type=jnp.float32) + b1_ref[...]
    h1 = jnp.maximum(h1, 0.0).astype(jnp.bfloat16)

    # fc2 + ReLU
    h2 = jnp.dot(h1, w2_ref[...], preferred_element_type=jnp.float32) + b2_ref[...]
    h2 = jnp.maximum(h2, 0.0).astype(jnp.bfloat16)

    # fc3 (logits, no activation)
    out = jnp.dot(h2, w3_ref[...], preferred_element_type=jnp.float32) + b3_ref[...]
    o_ref[...] = out.astype(o_ref.dtype)


@functools.partial(jax.jit, static_argnames=("block_b",))
def feature_classificator_forward(x, params, block_b=4096):
    """x: (B, num_features) f32. params: dict of w1,b1,w2,b2,w3,b3 (weights as (in, out))."""
    B, F = x.shape
    H1 = params["w1"].shape[1]          # 128
    H2 = params["w2"].shape[1]          # 64
    C = params["w3"].shape[1]           # num_classes

    # Balanced ragged-batch tiling: choose step count first, then the smallest
    # 8-aligned tile that covers B in that many steps (<1% zero-row waste).
    num_steps = pl.cdiv(B, block_b)
    if B >= 16:
        num_steps = max(num_steps, 2)   # keep both v7x TensorCores busy
    bb = ((pl.cdiv(B, num_steps)) + 7) // 8 * 8
    Bp = num_steps * bb
    if Bp != B:
        x = jnp.pad(x, ((0, Bp - B), (0, 0)))

    # MXU inputs in bf16 (cast once here); biases stay f32 for the f32 bias-add.
    x_bf = x.astype(jnp.bfloat16)
    w1 = params["w1"].astype(jnp.bfloat16)
    w2 = params["w2"].astype(jnp.bfloat16)
    w3 = params["w3"].astype(jnp.bfloat16)
    b1, b2, b3 = params["b1"], params["b2"], params["b3"]

    # Weights / biases are small: constant index map -> stay resident, no re-DMA per step.
    full = lambda shape: pl.BlockSpec(shape, lambda i: tuple(0 for _ in shape))

    flops = 2 * Bp * (F * H1 + H1 * H2 + H2 * C)
    bytes_accessed = (
        Bp * F * 2                                  # x (bf16)
        + (F * H1 + H1 * H2 + H2 * C) * 2           # weights (bf16)
        + (H1 + H2 + C) * 4                         # biases (f32)
        + Bp * C * 4                                # logits out (f32)
    )

    out = pl.pallas_call(
        _mlp_kernel,
        out_shape=jax.ShapeDtypeStruct((Bp, C), jnp.float32),
        grid_spec=pltpu.PrefetchScalarGridSpec(
            num_scalar_prefetch=0,
            grid=(num_steps,),
            in_specs=[
                pl.BlockSpec((bb, F), lambda i: (i, 0)),        # x tile (batch loop)
                full((F, H1)), full((1, H1)),                   # fc1
                full((H1, H2)), full((1, H2)),                  # fc2
                full((H2, C)), full((1, C)),                    # fc3 (un-padded classes)
            ],
            out_specs=pl.BlockSpec((bb, C), lambda i: (i, 0)),
        ),
        compiler_params=pltpu.CompilerParams(
            dimension_semantics=("parallel",)   # batch tiles shard across TCs (v7x)
        ),
        cost_estimate=pl.CostEstimate(
            flops=flops, transcendentals=0, bytes_accessed=bytes_accessed
        ),
    )(x_bf, w1, b1, w2, b2, w3, b3)

    return out[:B]


def init_params(key, num_features, num_classes):
    """Deterministic synthetic init matching nn.Linear shapes (stored as (in, out))."""
    dims = [(num_features, 128), (128, 64), (64, num_classes)]
    keys = jax.random.split(key, 2 * len(dims))
    params = {}
    for idx, (fan_in, fan_out) in enumerate(dims):
        bound = 1.0 / jnp.sqrt(fan_in)
        w = jax.random.uniform(keys[2 * idx], (fan_in, fan_out),
                               minval=-bound, maxval=bound, dtype=jnp.float32)
        b = jax.random.uniform(keys[2 * idx + 1], (1, fan_out),
                               minval=-bound, maxval=bound, dtype=jnp.float32)
        params[f"w{idx + 1}"] = w
        params[f"b{idx + 1}"] = b
    return params


def reference_forward(x, params):
    """f32 reference (highest precision) — tolerance loosened for bf16 MXU inputs."""
    h1 = jnp.maximum(
        jnp.dot(x, params["w1"], precision=jax.lax.Precision.HIGHEST) + params["b1"], 0.0)
    h2 = jnp.maximum(
        jnp.dot(h1, params["w2"], precision=jax.lax.Precision.HIGHEST) + params["b2"], 0.0)
    return jnp.dot(h2, params["w3"], precision=jax.lax.Precision.HIGHEST) + params["b3"]


if __name__ == "__main__":
    key = jax.random.PRNGKey(0)
    k_x, k_p = jax.random.split(key)

    batch = 300          # not a multiple of the tile -> exercises balanced ragged tiling
    num_features = 32
    num_classes = 10

    x = jax.random.normal(k_x, (batch, num_features), dtype=jnp.float32)
    params = init_params(k_p, num_features, num_classes)

    # block_b=256 -> 2 balanced grid steps of 152 rows here; default is 4096 for large B.
    out = feature_classificator_forward(x, params, block_b=256)
    out = jax.block_until_ready(out)

    ref = reference_forward(x, params)
    assert out.shape == (batch, num_classes)
    # bf16 MXU inputs -> ~1e-2 relative accuracy vs the f32 reference.
    assert jnp.allclose(out, ref, atol=3e-2, rtol=3e-2), "mismatch vs reference"

    print("KERNEL_OK")
</pallas_src>

<mosaic_0001>
module attributes {stable_mosaic.version = 11 : i64} {
  func.func @_mlp_kernel(%arg0: i32, %arg1: memref<152x32xbf16, #tpu.memory_space<vmem>>, %arg2: memref<32x128xbf16, #tpu.memory_space<vmem>>, %arg3: memref<1x128xf32, #tpu.memory_space<vmem>>, %arg4: memref<128x64xbf16, #tpu.memory_space<vmem>>, %arg5: memref<1x64xf32, #tpu.memory_space<vmem>>, %arg6: memref<64x10xbf16, #tpu.memory_space<vmem>>, %arg7: memref<1x10xf32, #tpu.memory_space<vmem>>, %arg8: memref<152x10xf32, #tpu.memory_space<vmem>>) attributes {dimension_semantics = [#tpu.dimension_semantics<parallel>], iteration_bounds = array<i64: 2>, scalar_prefetch = 0 : i64, scratch_operands = 0 : i64, tpu.core_type = #tpu.core_type<tc>, window_params = [{transform_indices = @transform_0, window_bounds = array<i64: 152, 32>}, {pipeline_mode = #tpu.pipeline_mode<synchronous>, transform_indices = @transform_1, window_bounds = array<i64: 32, 128>}, {pipeline_mode = #tpu.pipeline_mode<synchronous>, transform_indices = @transform_2, window_bounds = array<i64: 1, 128>}, {pipeline_mode = #tpu.pipeline_mode<synchronous>, transform_indices = @transform_3, window_bounds = array<i64: 128, 64>}, {pipeline_mode = #tpu.pipeline_mode<synchronous>, transform_indices = @transform_4, window_bounds = array<i64: 1, 64>}, {pipeline_mode = #tpu.pipeline_mode<synchronous>, transform_indices = @transform_5, window_bounds = array<i64: 64, 10>}, {pipeline_mode = #tpu.pipeline_mode<synchronous>, transform_indices = @transform_6, window_bounds = array<i64: 1, 10>}, {transform_indices = @transform_7, window_bounds = array<i64: 152, 10>}]} {
    %c0 = arith.constant 0 : index
    %c0_0 = arith.constant 0 : index
    %0 = vector.load %arg1[%c0, %c0_0] : memref<152x32xbf16, #tpu.memory_space<vmem>>, vector<152x32xbf16>
    %c0_1 = arith.constant 0 : index
    %c0_2 = arith.constant 0 : index
    %1 = vector.load %arg2[%c0_1, %c0_2] : memref<32x128xbf16, #tpu.memory_space<vmem>>, vector<32x128xbf16>
    %cst = arith.constant dense<0.000000e+00> : vector<152x128xf32>
    %2 = tpu.matmul %0, %1, %cst {dimension_numbers = #tpu.dot_dimension_numbers<[1], [0], [0], [1], [0, 0, 1, 1], [], []>} : vector<152x32xbf16>, vector<32x128xbf16>, vector<152x128xf32> -> vector<152x128xf32>
    %c0_3 = arith.constant 0 : index
    %c0_4 = arith.constant 0 : index
    %3 = vector.load %arg3[%c0_3, %c0_4] : memref<1x128xf32, #tpu.memory_space<vmem>>, vector<1x128xf32>
    %4 = vector.broadcast %3 : vector<1x128xf32> to vector<152x128xf32>
    %5 = arith.addf %2, %4 : vector<152x128xf32>
    %cst_5 = arith.constant 0.000000e+00 : f32
    %6 = vector.broadcast %cst_5 : f32 to vector<152x128xf32>
    %7 = arith.maximumf %5, %6 : vector<152x128xf32>
    %8 = arith.truncf %7 : vector<152x128xf32> to vector<152x128xbf16>
    %c0_6 = arith.constant 0 : index
    %c0_7 = arith.constant 0 : index
    %9 = vector.load %arg4[%c0_6, %c0_7] : memref<128x64xbf16, #tpu.memory_space<vmem>>, vector<128x64xbf16>
    %cst_8 = arith.constant dense<0.000000e+00> : vector<152x64xf32>
    %10 = tpu.matmul %8, %9, %cst_8 {dimension_numbers = #tpu.dot_dimension_numbers<[1], [0], [0], [1], [0, 0, 1, 1], [], []>} : vector<152x128xbf16>, vector<128x64xbf16>, vector<152x64xf32> -> vector<152x64xf32>
    %c0_9 = arith.constant 0 : index
    %c0_10 = arith.constant 0 : index
    %11 = vector.load %arg5[%c0_9, %c0_10] : memref<1x64xf32, #tpu.memory_space<vmem>>, vector<1x64xf32>
    %12 = vector.broadcast %11 : vector<1x64xf32> to vector<152x64xf32>
    %13 = arith.addf %10, %12 : vector<152x64xf32>
    %cst_11 = arith.constant 0.000000e+00 : f32
    %14 = vector.broadcast %cst_11 : f32 to vector<152x64xf32>
    %15 = arith.maximumf %13, %14 : vector<152x64xf32>
    %16 = arith.truncf %15 : vector<152x64xf32> to vector<152x64xbf16>
    %c0_12 = arith.constant 0 : index
    %c0_13 = arith.constant 0 : index
    %17 = vector.load %arg6[%c0_12, %c0_13] : memref<64x10xbf16, #tpu.memory_space<vmem>>, vector<64x10xbf16>
    %cst_14 = arith.constant dense<0.000000e+00> : vector<152x10xf32>
    %18 = tpu.matmul %16, %17, %cst_14 {dimension_numbers = #tpu.dot_dimension_numbers<[1], [0], [0], [1], [0, 0, 1, 1], [], []>} : vector<152x64xbf16>, vector<64x10xbf16>, vector<152x10xf32> -> vector<152x10xf32>
    %c0_15 = arith.constant 0 : index
    %c0_16 = arith.constant 0 : index
    %19 = vector.load %arg7[%c0_15, %c0_16] : memref<1x10xf32, #tpu.memory_space<vmem>>, vector<1x10xf32>
    %20 = vector.broadcast %19 : vector<1x10xf32> to vector<152x10xf32>
    %21 = arith.addf %18, %20 : vector<152x10xf32>
    %c0_17 = arith.constant 0 : index
    %c0_18 = arith.constant 0 : index
    %22 = vector.load %arg8[%c0_17, %c0_18] : memref<152x10xf32, #tpu.memory_space<vmem>>, vector<152x10xf32>
    tpu.vector_store %arg8[%c0_17, %c0_18], %21 {strides = array<i32>} : memref<152x10xf32, #tpu.memory_space<vmem>>, vector<152x10xf32>,
    return
  }
  func.func @transform_0(%arg0: i32) -> (i32, i32) {
    %c0_i32 = arith.constant 0 : i32
    %c0_i32_0 = arith.constant 0 : i32
    return %arg0, %c0_i32 : i32, i32
  }
  func.func @transform_1(%arg0: i32) -> (i32, i32) {
    %c0_i32 = arith.constant 0 : i32
    %c0_i32_0 = arith.constant 0 : i32
    %c0_i32_1 = arith.constant 0 : i32
    return %c0_i32, %c0_i32_0 : i32, i32
  }
  func.func @transform_2(%arg0: i32) -> (i32, i32) {
    %c0_i32 = arith.constant 0 : i32
    %c0_i32_0 = arith.constant 0 : i32
    %c0_i32_1 = arith.constant 0 : i32
    return %c0_i32, %c0_i32_0 : i32, i32
  }
  func.func @transform_3(%arg0: i32) -> (i32, i32) {
    %c0_i32 = arith.constant 0 : i32
    %c0_i32_0 = arith.constant 0 : i32
    %c0_i32_1 = arith.constant 0 : i32
    return %c0_i32, %c0_i32_0 : i32, i32
  }
  func.func @transform_4(%arg0: i32) -> (i32, i32) {
    %c0_i32 = arith.constant 0 : i32
    %c0_i32_0 = arith.constant 0 : i32
    %c0_i32_1 = arith.constant 0 : i32
    return %c0_i32, %c0_i32_0 : i32, i32
  }
  func.func @transform_5(%arg0: i32) -> (i32, i32) {
    %c0_i32 = arith.constant 0 : i32
    %c0_i32_0 = arith.constant 0 : i32
    %c0_i32_1 = arith.constant 0 : i32
    return %c0_i32, %c0_i32_0 : i32, i32
  }
  func.func @transform_6(%arg0: i32) -> (i32, i32) {
    %c0_i32 = arith.constant 0 : i32
    %c0_i32_0 = arith.constant 0 : i32
    %c0_i32_1 = arith.constant 0 : i32
    return %c0_i32, %c0_i32_0 : i32, i32
  }
  func.func @transform_7(%arg0: i32) -> (i32, i32) {
    %c0_i32 = arith.constant 0 : i32
    %c0_i32_0 = arith.constant 0 : i32
    return %arg0, %c0_i32 : i32, i32
  }
}

</mosaic_0001>

<bundles_post_ra>
// kernel: feature_classificator_forward.1
= control target key start
LH: loop header
LB: loop body
LE: loop exit
PB: predicated region body
PF: predicated region fallthrough
CT: control target
= control target key end

     0   :  { %s1287_s24 = smov 0   ;;  %s1473_s0 = inlined_call_operand.vmem [shape: bf16[304,32], index: 0, kind: input, shape index: {}]   ;;  %s1474_s1 = inlined_call_operand.vmem [shape: bf16[32,128], index: 1, kind: input, shape index: {}]   ;;  %s1475_s2 = inlined_call_operand.vmem [shape: f32[1,128], index: 2, kind: input, shape index: {}]   ;;  %s1476_s3 = inlined_call_operand.vmem [shape: bf16[128,64], index: 3, kind: input, shape index: {}]   ;;  %s1477_s4 = inlined_call_operand.vmem [shape: f32[1,64], index: 4, kind: input, shape index: {}]   ;;  %s1478_s5 = inlined_call_operand.vmem [shape: bf16[64,10], index: 5, kind: input, shape index: {}]   ;;  %s1479_s6 = inlined_call_operand.vmem [shape: f32[1,10], index: 6, kind: input, shape index: {}]   ;;  %s1480_s7 = inlined_call_operand.vmem [shape: f32[304,10], index: 7, kind: output, shape index: {}]  }
   0x1 LB: > { %s1015_s25 = sadd.s32 4294967295, %s1245_s24   ;;  %p1019_p0 = scmp.ge.s32.totalorder %s1245_s24, 1  ;;  %s1245_s24 = sphi %s1287_s24, %s17_s24  }
   0x2   : > { %p238_p1 = scmp.lt.s32.totalorder %s1245_s24, 3 }
   0x4   : > { %p239_p2 = pnand %p1019_p0, %p238_p1 }
   0x5   : > { %v1215_v0 = vld [vmem:[%s1474_s1] sm:$0xff] (!%p239_p2)   ;;  %s270_s28 = smul.u32 (!%p239_p2), 19, %s1015_s25  ;;  %v1216_v1 = vld [vmem:[%s1474_s1 + $0x8] sm:$0xff] (!%p239_p2)   ;;  %vm373_vm0 = vcmask (!%p239_p2), 261120   ;;  %v1229_v11 = vld [vmem:[%s1476_s3 + $0x10] sm:$0xff] (!%p239_p2)   ;;  %vm796_vm1 = vcmask (!%p239_p2), 523264  }
   0x6   : > { %242 = sbr.rel (%p239_p2) target bundleno = 712 (0x2c8), region = 48  ;;  %1115 = vmatprep.subr.bf16.mxu0 (!%p239_p2), %v1215_v0  ;;  %1203 = vmatprep.subr.bf16.mxu1 (!%p239_p2), %v1215_v0  ;;  %v1227_v2 = vld [vmem:[%s1476_s3] sm:$0xff] (!%p239_p2)   ;;  %v1228_v6 = vld [vmem:[%s1476_s3 + $0x8] sm:$0xff] (!%p239_p2)   ;;  %v1230_v14 = vld [vmem:[%s1476_s3 + $0x18] sm:$0xff] (!%p239_p2)   ;;  %vm939_vm2 = vcmask (!%p239_p2), 80896  }
   0x7   : > { %p271_p3 = scmp.lt.s32.totalorder (!%p239_p2), %s270_s28, 37  ;;  %1116 = vmatpush3.bf16.msra.mxu0 (!%p239_p2), %v1215_v0  ;;  %1205 = vmatpush3.bf16.msra.mxu1 (!%p239_p2), %v1215_v0  ;;  %v1231_v15 = vld [vmem:[%s1476_s3 + $0x20] sm:$0xff] (!%p239_p2)   ;;  %v1232_v17 = vld [vmem:[%s1476_s3 + $0x28] sm:$0xff] (!%p239_p2)   ;;  %v1233_v18 = vld [vmem:[%s1476_s3 + $0x30] sm:$0xff] (!%p239_p2)  }
   0x8   : > { %1117 = vmatprep.subr.bf16.mxu0 (!%p239_p2), %v1216_v1  ;;  %1204 = vmatprep.subr.bf16.mxu1 (!%p239_p2), %v1216_v1  ;;  %v1234_v19 = vld [vmem:[%s1476_s3 + $0x38] sm:$0xff] (!%p239_p2)   ;;  %v1235_v20 = vld [vmem:[%s1478_s5] sm:$0xff] (!%p239_p2)   ;;  %v1236_v21 = vld [vmem:[%s1478_s5 + $0x8] sm:$0xff] (!%p239_p2)  }
   0x9   : > { %v1362_v22 = vld [vmem:[%s1475_s2] ss:$0 sm:$0xff] (!%p239_p2) }
   0xb   : > { %1118 = vmatpush3.bf16.msra.mxu0 (!%p239_p2), %v1216_v1  ;;  %1206 = vmatpush3.bf16.msra.mxu1 (!%p239_p2), %v1216_v1 }
   0xc   : > { %1139 = vmatprep.subr.bf16.mxu1 (!%p239_p2), %v1227_v2  ;;  %1175 = vmatprep.subr.bf16.mxu0 (!%p239_p2), %v1235_v20 }
   0xd   : > { %s1482_s28 = smov (!%p271_p3, %s270_s28), 37 }
   0xe   : > { %s1020_s10 = sshll.u32 %s1482_s28, 2  ;;  %s1021_s19 = sshll.u32 %s1482_s28, 3 }
   0xf   : > { %s1310_s13 = scalar_lea.vmem %s1473_s0, %s1020_s10  ;;  %s1430_s25 = scalar_lea.vmem %s1480_s7, %s1021_s19 }
  0x10   : > { %v1217_v3 = vld [vmem:[%s1310_s13] sm:$0xff]   ;;  %v1218_v4 = vld [vmem:[%s1310_s13 + $0x8] sm:$0xff]   ;;  %v1219_v5 = vld [vmem:[%s1310_s13 + $0x10] sm:$0xff]  }
  0x11   : > { %1119 = vmatprep.mubr.msk.bf16.mxu0 %vm373_vm0, %v1217_v3  ;;  %v1221_v7 = vld [vmem:[%s1310_s13 + $0x20] sm:$0xff]   ;;  %v1222_v8 = vld [vmem:[%s1310_s13 + $0x28] sm:$0xff]   ;;  %v1223_v9 = vld [vmem:[%s1310_s13 + $0x30] sm:$0xff]  }
  0x12   : > { %1120 = vmatmul.mubr.msk.bf16.vlgmr.msra.gmra.mrb[0].mxu0 %vm373_vm0, %v1218_v4  ;;  %1127 = vmatprep.mubr.msk.bf16.mxu1 %vm373_vm0, %v1221_v7  ;;  %v1220_v10 = vld [vmem:[%s1310_s13 + $0x18] sm:$0xff]   ;;  %v1225_v13 = vld [vmem:[%s1310_s13 + $0x40] sm:$0xff]   ;;  %v1226_v16 = vld [vmem:[%s1310_s13 + $0x48] ss:$0 sps:$4 sm:$0xff]  }
  0x13   : > { %1123 = vmatprep.mubr.msk.bf16.mxu0 %vm373_vm0, %v1219_v5  ;;  %1128 = vmatmul.mubr.msk.bf16.vlgmr.msra.gmra.mrb[0].mxu1 %vm373_vm0, %v1222_v8  ;;  %v1224_v12 = vld [vmem:[%s1310_s13 + $0x38] sm:$0xff]  }
  0x14   : > { %1131 = vmatprep.mubr.msk.bf16.mxu1 %vm373_vm0, %v1223_v9  ;;  %1140 = vmatpush3.bf16.msra.mxu1 %v1227_v2 }
  0x15   : > { %1141 = vmatprep.subr.bf16.mxu1 %v1228_v6  ;;  %1176 = vmatpush3.bf16.msra.mxu0 %v1235_v20 }
  0x16   : > { %1177 = vmatprep.subr.bf16.mxu0 %v1236_v21 }
  0x18   : > { %1142 = vmatpush3.bf16.msra.mxu1 %v1228_v6 }
  0x19   : > { %1143 = vmatprep.subr.bf16.mxu1 %v1229_v11  ;;  %1178 = vmatpush3.bf16.msra.mxu0 %v1236_v21 }
  0x1a   : > { %1124 = vmatmul.mubr.msk.bf16.gmra.mrb[4].mxu0 %vm373_vm0, %v1220_v10 }
  0x1b   : > { %1132 = vmatmul.mubr.msk.bf16.gmra.mrb[4].mxu1 %vm373_vm0, %v1224_v12 }
  0x1c   : > { %1135 = vmatprep.mubr.msk.bf16.mxu1 %vm373_vm0, %v1225_v13  ;;  %1144 = vmatpush3.bf16.msra.mxu1 %v1229_v11 }
  0x1d   : > { %1145 = vmatprep.subr.bf16.mxu1 %v1230_v14 }
  0x20   : > { %1146 = vmatpush3.bf16.msra.mxu1 %v1230_v14 }
  0x21   : > { %1147 = vmatprep.subr.bf16.mxu1 %v1231_v15 }
  0x23   : > { %1136 = vmatmul.mubr.msk.bf16.gmra.mrb[8].mxu1 %vm373_vm0, %v1226_v16 }
  0x24   : > { %1148 = vmatpush3.bf16.msra.mxu1 %v1231_v15 }
  0x25   : > { %1149 = vmatprep.subr.bf16.mxu1 %v1232_v17 }
  0x28   : > { %1150 = vmatpush3.bf16.msra.mxu1 %v1232_v17 }
  0x29   : > { %1151 = vmatprep.subr.bf16.mxu1 %v1233_v18 }
  0x2c   : > { %1152 = vmatpush3.bf16.msra.mxu1 %v1233_v18 }
  0x2d   : > { %1153 = vmatprep.subr.bf16.mxu1 %v1234_v19 }
  0x30   : > { %1154 = vmatpush3.bf16.msra.mxu1 %v1234_v19 }
  0xe5   : > { %v1121_v23 = vpop.f32.mrb[0].mxu0 }
  0xe6   : > { %v447_v24 = vadd.f32 %v1121_v23, %v1362_v22  ;;  %v438_v25 = vpop.f32.mrb[1].mxu0  ;;  %v1129_v31 = vpop.f32.mrb[0].mxu1 }
  0xe7   : > { %v439_v26 = vadd.f32 %v1362_v22, %v438_v25  ;;  %v1122_v27 = vpop.f32.mrb[2].mxu0  ;;  %v479_v34 = vadd.f32 %v1129_v31, %v1362_v22  ;;  %v470_v35 = vpop.f32.mrb[1].mxu1 }
  0xe8   : > { %v450_v28 = vadd.f32 %v1122_v27, %v1362_v22  ;;  %v441_v29 = vpop.f32.mrb[3].mxu0  ;;  %v518_v32 = vmax.f32 %v447_v24, 0.0  ;;  %v471_v38 = vadd.f32 %v1362_v22, %v470_v35  ;;  %v1130_v39 = vpop.f32.mrb[2].mxu1 }
  0xe9   : > { %v442_v30 = vadd.f32 %v1362_v22, %v441_v29  ;;  %v516_v36 = vmax.f32 %v439_v26, 0.0  ;;  %v526_v41 = vmax.f32 %v479_v34, 0.0  ;;  %v482_v42 = vadd.f32 %v1130_v39, %v1362_v22  ;;  %v473_v43 = vpop.f32.mrb[3].mxu1  ;;  %v1238_v29 = vld [vmem:[%s1478_s5 + $0x18] sm:$0xff]  }
  0xea   : > { %v519_v33 = vmax.f32 %v450_v28, 0.0  ;;  %v524_v46 = vmax.f32 %v471_v38, 0.0  ;;  %v474_v47 = vadd.f32 %v1362_v22, %v473_v43  ;;  %v1237_v28 = vld [vmem:[%s1478_s5 + $0x10] sm:$0xff]  }
  0xeb   : > { %v517_v37 = vmax.f32 %v442_v30, 0.0  ;;  %v527_v50 = vmax.f32 %v482_v42, 0.0  ;;  %1179 = vmatprep.subr.bf16.mxu0 %v1237_v28 }
  0xec   : > { %v536_v40 = vpack.c.bf16 %v519_v33, %v518_v32  ;;  %v525_v53 = vmax.f32 %v474_v47, 0.0  ;;  %1180 = vmatpush3.bf16.msra.mxu0 %v1237_v28 }
  0xed   : > { %v535_v44 = vpack.c.bf16 %v517_v37, %v516_v36  ;;  %v1125_v45 = vpop.f32.mrb[4].mxu0  ;;  %v540_v56 = vpack.c.bf16 %v527_v50, %v526_v41  ;;  %1181 = vmatprep.subr.bf16.mxu0 %v1238_v29 }
  0xee   : > { %v463_v48 = vadd.f32 %v1125_v45, %v1362_v22  ;;  %v454_v49 = vpop.f32.mrb[5].mxu0  ;;  %v539_v58 = vpack.c.bf16 %v525_v53, %v524_v46  ;;  %v1133_v59 = vpop.f32.mrb[4].mxu1 }
  0xef   : > { %v455_v51 = vadd.f32 %v1362_v22, %v454_v49  ;;  %v1126_v52 = vpop.f32.mrb[6].mxu0  ;;  %1155 = vmatprep.mubr.bf16.mxu1 %v535_v44  ;;  %v495_v62 = vadd.f32 %v1133_v59, %v1362_v22  ;;  %v486_v63 = vpop.f32.mrb[5].mxu1 }
  0xf0   : > { %v466_v54 = vadd.f32 %v1126_v52, %v1362_v22  ;;  %v457_v55 = vpop.f32.mrb[7].mxu0  ;;  %1156 = vmatmul.mubr.bf16.vlgmr.msra.gmra.mrb[12].mxu1 %v536_v40  ;;  %v522_v60 = vmax.f32 %v463_v48, 0.0  ;;  %v487_v2 = vadd.f32 %v1362_v22, %v486_v63  ;;  %v1134_v3 = vpop.f32.mrb[6].mxu1  ;;  %1182 = vmatpush3.bf16.msra.mxu0 %v1238_v29 }
  0xf1   : > { %v458_v57 = vadd.f32 %v1362_v22, %v457_v55  ;;  %v520_v0 = vmax.f32 %v455_v51, 0.0  ;;  %v530_v5 = vmax.f32 %v495_v62, 0.0  ;;  %v498_v6 = vadd.f32 %v1134_v3, %v1362_v22  ;;  %v489_v7 = vpop.f32.mrb[7].mxu1 }
  0xf2   : > { %v523_v61 = vmax.f32 %v466_v54, 0.0  ;;  %v528_v9 = vmax.f32 %v487_v2, 0.0  ;;  %v490_v10 = vadd.f32 %v1362_v22, %v489_v7 }
  0xf3   : > { %v521_v1 = vmax.f32 %v458_v57, 0.0  ;;  %v531_v11 = vmax.f32 %v498_v6, 0.0 }
  0xf4   : > { %v538_v4 = vpack.c.bf16 %v523_v61, %v522_v60  ;;  %v529_v12 = vmax.f32 %v490_v10, 0.0 }
  0xf5   : > { %v537_v8 = vpack.c.bf16 %v521_v1, %v520_v0  ;;  %v542_v13 = vpack.c.bf16 %v531_v11, %v530_v5 }
  0xf6   : > { %v541_v14 = vpack.c.bf16 %v529_v12, %v528_v9  ;;  %v1137_v15 = vpop.f32.mrb[8].mxu1 }
  0xf7   : > { %1159 = vmatprep.mubr.bf16.mxu1 %v537_v8  ;;  %v502_v16 = vpop.f32.mrb[9].mxu1  ;;  %v511_v25 = vadd.f32 %v1137_v15, %v1362_v22 }
  0xf8   : > { %1160 = vmatmul.mubr.bf16.gmra.mrb[16].mxu1 %v538_v4  ;;  %v503_v17 = vadd.f32 %v1362_v22, %v502_v16  ;;  %v1138_v18 = vpop.f32.mrb[10].mxu1 }
  0xf9   : > { %1163 = vmatprep.mubr.bf16.mxu1 %v539_v58  ;;  %v505_v19 = vpop.f32.mrb[11].mxu1  ;;  %v534_v26 = vmax.f32 %v511_v25, 0.0 }
  0xfa   : > { %v532_v20 = vmax.f32 %v503_v17, 0.0  ;;  %v506_v21 = vadd.f32 %v1362_v22, %v505_v19  ;;  %v1392_v22 = vld [vmem:[%s1477_s4] ss:$0 sm:$0xff] }
  0xfb   : > { %v544_v27 = vpack.c.bf16 %v534_v26, %v534_v26 }
  0xfc   : > { %v533_v23 = vmax.f32 %v506_v21, 0.0 }
  0xfe   : > { %v543_v24 = vpack.c.bf16 %v533_v23, %v532_v20 }
 0x100   : > { %1164 = vmatmul.mubr.bf16.gmra.mrb[20].mxu1 %v540_v56 }
 0x101   : > { %1167 = vmatprep.mubr.bf16.mxu1 %v541_v14 }
 0x108   : > { %1168 = vmatmul.mubr.bf16.gmra.mrb[24].mxu1 %v542_v13 }
 0x109   : > { %1171 = vmatprep.mubr.bf16.mxu1 %v543_v24 }
 0x110   : > { %1172 = vmatmul.mubr.bf16.gmra.mrb[28].mxu1 %v544_v27 }
 0x1c3   : > { %v1157_v30 = vpop.f32.mrb[12].mxu1 }
 0x1c4   : > { %v659_v31 = vadd.f32 %v1157_v30, %v1392_v22  ;;  %v650_v32 = vpop.f32.mrb[13].mxu1 }
 0x1c5   : > { %v651_v33 = vadd.f32 %v1392_v22, %v650_v32  ;;  %v1158_v34 = vpop.f32.mrb[14].mxu1 }
 0x1c6   : > { %v662_v35 = vadd.f32 %v1158_v34, %v1392_v22  ;;  %v653_v36 = vpop.f32.mrb[15].mxu1  ;;  %v730_v38 = vmax.f32 %v659_v31, 0.0 }
 0x1c7   : > { %v654_v37 = vadd.f32 %v1392_v22, %v653_v36  ;;  %v728_v40 = vmax.f32 %v651_v33, 0.0 }
 0x1c8   : > { %v731_v39 = vmax.f32 %v662_v35, 0.0  ;;  %v1054_v35 = vld [vmem:[%s1479_s6] ss:$0 sm:$0xff] }
 0x1c9   : > { %v729_v41 = vmax.f32 %v654_v37, 0.0 }
 0x1ca   : > { %v748_v42 = vpack.c.bf16 %v731_v39, %v730_v38 }
 0x1cb   : > { %v747_v43 = vpack.c.bf16 %v729_v41, %v728_v40  ;;  %v1161_v44 = vpop.f32.mrb[16].mxu1 }
 0x1cc   : > { %v675_v45 = vadd.f32 %v1161_v44, %v1392_v22  ;;  %v666_v46 = vpop.f32.mrb[17].mxu1 }
 0x1cd   : > { %v667_v47 = vadd.f32 %v1392_v22, %v666_v46  ;;  %v1162_v48 = vpop.f32.mrb[18].mxu1  ;;  %1183 = vmatprep.mubr.msk.bf16.mxu0 %vm796_vm1, %v747_v43 }
 0x1ce   : > { %v678_v49 = vadd.f32 %v1162_v48, %v1392_v22  ;;  %v669_v50 = vpop.f32.mrb[19].mxu1  ;;  %1184 = vmatmul.mubr.msk.bf16.vlgmr.msra.gmra.mrb[8].mxu0 %vm796_vm1, %v748_v42  ;;  %v734_v52 = vmax.f32 %v675_v45, 0.0 }
 0x1cf   : > { %v670_v51 = vadd.f32 %v1392_v22, %v669_v50  ;;  %v732_v54 = vmax.f32 %v667_v47, 0.0 }
 0x1d0   : > { %v735_v53 = vmax.f32 %v678_v49, 0.0 }
 0x1d1   : > { %v733_v55 = vmax.f32 %v670_v51, 0.0 }
 0x1d2   : > { %v750_v56 = vpack.c.bf16 %v735_v53, %v734_v52 }
 0x1d3   : > { %v749_v57 = vpack.c.bf16 %v733_v55, %v732_v54  ;;  %v1165_v58 = vpop.f32.mrb[20].mxu1 }
 0x1d4   : > { %v691_v59 = vadd.f32 %v1165_v58, %v1392_v22  ;;  %v682_v60 = vpop.f32.mrb[21].mxu1 }
 0x1d5   : > { %v683_v61 = vadd.f32 %v1392_v22, %v682_v60  ;;  %v1166_v62 = vpop.f32.mrb[22].mxu1  ;;  %1187 = vmatprep.mubr.msk.bf16.mxu0 %vm796_vm1, %v749_v57 }
 0x1d6   : > { %v694_v63 = vadd.f32 %v1166_v62, %v1392_v22  ;;  %v685_v0 = vpop.f32.mrb[23].mxu1  ;;  %1188 = vmatmul.mubr.msk.bf16.gmra.mrb[12].mxu0 %vm796_vm1, %v750_v56  ;;  %v738_v2 = vmax.f32 %v691_v59, 0.0 }
 0x1d7   : > { %v686_v1 = vadd.f32 %v1392_v22, %v685_v0  ;;  %v736_v4 = vmax.f32 %v683_v61, 0.0 }
 0x1d8   : > { %v739_v3 = vmax.f32 %v694_v63, 0.0 }
 0x1d9   : > { %v737_v5 = vmax.f32 %v686_v1, 0.0 }
 0x1da   : > { %v752_v6 = vpack.c.bf16 %v739_v3, %v738_v2 }
 0x1db   : > { %v751_v7 = vpack.c.bf16 %v737_v5, %v736_v4  ;;  %v1169_v8 = vpop.f32.mrb[24].mxu1 }
 0x1dc   : > { %v707_v9 = vadd.f32 %v1169_v8, %v1392_v22  ;;  %v698_v10 = vpop.f32.mrb[25].mxu1 }
 0x1dd   : > { %v699_v11 = vadd.f32 %v1392_v22, %v698_v10  ;;  %v1170_v12 = vpop.f32.mrb[26].mxu1  ;;  %1191 = vmatprep.mubr.msk.bf16.mxu0 %vm796_vm1, %v751_v7 }
 0x1de   : > { %v710_v13 = vadd.f32 %v1170_v12, %v1392_v22  ;;  %v701_v14 = vpop.f32.mrb[27].mxu1  ;;  %1192 = vmatmul.mubr.msk.bf16.gmra.mrb[16].mxu0 %vm796_vm1, %v752_v6  ;;  %v742_v16 = vmax.f32 %v707_v9, 0.0 }
 0x1df   : > { %v702_v15 = vadd.f32 %v1392_v22, %v701_v14  ;;  %v740_v18 = vmax.f32 %v699_v11, 0.0 }
 0x1e0   : > { %v743_v17 = vmax.f32 %v710_v13, 0.0 }
 0x1e1   : > { %v741_v19 = vmax.f32 %v702_v15, 0.0 }
 0x1e2   : > { %v754_v20 = vpack.c.bf16 %v743_v17, %v742_v16 }
 0x1e3   : > { %v753_v21 = vpack.c.bf16 %v741_v19, %v740_v18  ;;  %v1173_v23 = vpop.f32.mrb[28].mxu1 }
 0x1e4   : > { %v723_v24 = vadd.f32 %v1173_v23, %v1392_v22  ;;  %v714_v25 = vpop.f32.mrb[29].mxu1 }
 0x1e5   : > { %v715_v26 = vadd.f32 %v1392_v22, %v714_v25  ;;  %v1174_v27 = vpop.f32.mrb[30].mxu1  ;;  %1195 = vmatprep.mubr.msk.bf16.mxu0 %vm796_vm1, %v753_v21 }
 0x1e6   : > { %v717_v28 = vpop.f32.mrb[31].mxu1  ;;  %1196 = vmatmul.mubr.msk.bf16.gmra.mrb[20].mxu0 %vm796_vm1, %v754_v20  ;;  %v746_v30 = vmax.f32 %v723_v24, 0.0 }
 0x1e7   : > { %v718_v29 = vadd.f32 %v1392_v22, %v717_v28  ;;  %v744_v31 = vmax.f32 %v715_v26, 0.0 }
 0x1e8   : > { %v756_v34 = vpack.c.bf16 %v746_v30, %v746_v30 }
 0x1e9   : > { %v745_v32 = vmax.f32 %v718_v29, 0.0 }
 0x1eb   : > { %v755_v33 = vpack.c.bf16 %v745_v32, %v744_v31 }
 0x1ed   : > { %1199 = vmatprep.mubr.msk.bf16.mxu0 %vm796_vm1, %v755_v33 }
 0x1ee   : > { %1200 = vmatmul.mubr.msk.bf16.gmra.mrb[24].mxu0 %vm796_vm1, %v756_v34 }
 0x2a1   : > { %v1185_v22 = vpop.f32.mrb[8].mxu0 }
 0x2a2   : > { %v870_v36 = vadd.f32 %v1185_v22, %v1054_v35  ;;  %v861_v37 = vpop.f32.mrb[9].mxu0 }
 0x2a3   : > { %v862_v38 = vadd.f32 %v1054_v35, %v861_v37  ;;  %v1186_v39 = vpop.f32.mrb[10].mxu0 }
 0x2a4   : > { %942 = vst.msk [vmem:[%s1430_s25 + $0x10] sm:$0xff] %vm939_vm2, %v870_v36  ;;  %v873_v40 = vadd.f32 %v1186_v39, %v1054_v35  ;;  %v864_v41 = vpop.f32.mrb[11].mxu0 }
 0x2a5   : > { %940 = vst.msk [vmem:[%s1430_s25] sm:$0xff] %vm939_vm2, %v862_v38  ;;  %v865_v42 = vadd.f32 %v1054_v35, %v864_v41 }
 0x2a6   : > { %943 = vst.msk [vmem:[%s1430_s25 + $0x18] sm:$0xff] %vm939_vm2, %v873_v40 }
 0x2a7   : > { %941 = vst.msk [vmem:[%s1430_s25 + $0x8] sm:$0xff] %vm939_vm2, %v865_v42 }
 0x2a9   : > { %v1189_v43 = vpop.f32.mrb[12].mxu0 }
 0x2aa   : > { %v886_v44 = vadd.f32 %v1189_v43, %v1054_v35  ;;  %v877_v45 = vpop.f32.mrb[13].mxu0 }
 0x2ab   : > { %v878_v46 = vadd.f32 %v1054_v35, %v877_v45  ;;  %v1190_v47 = vpop.f32.mrb[14].mxu0 }
 0x2ac   : > { %946 = vst.msk [vmem:[%s1430_s25 + $0x30] sm:$0xff] %vm939_vm2, %v886_v44  ;;  %v889_v48 = vadd.f32 %v1190_v47, %v1054_v35  ;;  %v880_v49 = vpop.f32.mrb[15].mxu0 }
 0x2ad   : > { %944 = vst.msk [vmem:[%s1430_s25 + $0x20] sm:$0xff] %vm939_vm2, %v878_v46  ;;  %v881_v50 = vadd.f32 %v1054_v35, %v880_v49 }
 0x2ae   : > { %947 = vst.msk [vmem:[%s1430_s25 + $0x38] sm:$0xff] %vm939_vm2, %v889_v48 }
 0x2af   : > { %945 = vst.msk [vmem:[%s1430_s25 + $0x28] sm:$0xff] %vm939_vm2, %v881_v50 }
 0x2b1   : > { %v1193_v51 = vpop.f32.mrb[16].mxu0 }
 0x2b2   : > { %v902_v52 = vadd.f32 %v1193_v51, %v1054_v35  ;;  %v893_v53 = vpop.f32.mrb[17].mxu0 }
 0x2b3   : > { %v894_v54 = vadd.f32 %v1054_v35, %v893_v53  ;;  %v1194_v55 = vpop.f32.mrb[18].mxu0 }
 0x2b4   : > { %950 = vst.msk [vmem:[%s1430_s25 + $0x50] sm:$0xff] %vm939_vm2, %v902_v52  ;;  %v905_v56 = vadd.f32 %v1194_v55, %v1054_v35  ;;  %v896_v57 = vpop.f32.mrb[19].mxu0 }
 0x2b5   : > { %948 = vst.msk [vmem:[%s1430_s25 + $0x40] sm:$0xff] %vm939_vm2, %v894_v54  ;;  %v897_v58 = vadd.f32 %v1054_v35, %v896_v57 }
 0x2b6   : > { %951 = vst.msk [vmem:[%s1430_s25 + $0x58] sm:$0xff] %vm939_vm2, %v905_v56 }
 0x2b7   : > { %949 = vst.msk [vmem:[%s1430_s25 + $0x48] sm:$0xff] %vm939_vm2, %v897_v58 }
 0x2b9   : > { %v1197_v59 = vpop.f32.mrb[20].mxu0 }
 0x2ba   : > { %v918_v60 = vadd.f32 %v1197_v59, %v1054_v35  ;;  %v909_v61 = vpop.f32.mrb[21].mxu0 }
 0x2bb   : > { %v910_v62 = vadd.f32 %v1054_v35, %v909_v61  ;;  %v1198_v63 = vpop.f32.mrb[22].mxu0 }
 0x2bc   : > { %954 = vst.msk [vmem:[%s1430_s25 + $0x70] sm:$0xff] %vm939_vm2, %v918_v60  ;;  %v921_v0 = vadd.f32 %v1198_v63, %v1054_v35  ;;  %v912_v1 = vpop.f32.mrb[23].mxu0 }
 0x2bd   : > { %952 = vst.msk [vmem:[%s1430_s25 + $0x60] sm:$0xff] %vm939_vm2, %v910_v62  ;;  %v913_v2 = vadd.f32 %v1054_v35, %v912_v1 }
 0x2be   : > { %955 = vst.msk [vmem:[%s1430_s25 + $0x78] sm:$0xff] %vm939_vm2, %v921_v0 }
 0x2bf   : > { %953 = vst.msk [vmem:[%s1430_s25 + $0x68] sm:$0xff] %vm939_vm2, %v913_v2 }
 0x2c1   : > { %v1201_v3 = vpop.f32.mrb[24].mxu0 }
 0x2c2   : > { %v934_v4 = vadd.f32 %v1201_v3, %v1054_v35  ;;  %v925_v5 = vpop.f32.mrb[25].mxu0 }
 0x2c3   : > { %v926_v6 = vadd.f32 %v1054_v35, %v925_v5  ;;  %v1202_v7 = vpop.f32.mrb[26].mxu0 }
 0x2c4   : > { %958 = vst.msk [vmem:[%s1430_s25 + $0x90] sm:$0xff] %vm939_vm2, %v934_v4  ;;  %v928_v8 = vpop.f32.mrb[27].mxu0 }
 0x2c5   : > { %956 = vst.msk [vmem:[%s1430_s25 + $0x80] sm:$0xff] %vm939_vm2, %v926_v6  ;;  %v929_v9 = vadd.f32 %v1054_v35, %v928_v8 }
 0x2c7   : > { %957 = vst.msk [vmem:[%s1430_s25 + $0x88] sm:$0xff] %vm939_vm2, %v929_v9 }
 0x2c8 PF: > { %s17_s24 = sadd.s32 1, %s1245_s24  }
 0x2c9   : > { %p14_p4 = scmp.ge.s32.totalorder %s17_s24, 4  }
 0x2cb   :  { %16 = sbr.rel (!%p14_p4) target bundleno = 1 (0x1), region = 78 }

</bundles_post_ra>
